<compile_context>
chip_gen: v7x
topology: tpu7x:2x2x1
jax: 0.10.0
libtpu: 0.0.40
codegen_flags: <defaults>
</compile_context>

<pallas_src>
import jax
import jax.numpy as jnp
from jax import lax
from jax.experimental import pallas as pl
from jax.experimental.pallas import tpu as pltpu

B = 2              # batch
C_IN = 4           # Conv1d in_channels
C_OUT = 12         # Conv1d out_channels
K = 3              # kernel size
L = 16             # sequence length
L_OUT = L - K + 1  # 14, 'valid' convolution (PyTorch default padding=0)


def conv1d_matmul_kernel(w_ref, cols_ref, o_ref):
    # w_ref:    (C_OUT, K*C_IN + 1)    weights with fused bias column
    # cols_ref: (K*C_IN + 1, B*L_OUT)  im2col matrix with trailing ones row
    # o_ref:    (C_OUT, B*L_OUT)       lane-dense output slab
    o_ref[...] = jnp.dot(
        w_ref[...], cols_ref[...],
        preferred_element_type=jnp.float32).astype(o_ref.dtype)


def prepare_weights(w, bias):
    """One-time init: flatten (C_OUT, C_IN, K) -> (C_OUT, K*C_IN) with row order
    k*C_IN + c and fuse the bias as an extra trailing column -> (C_OUT, K*C_IN+1)."""
    w_flat = jnp.transpose(w, (0, 2, 1)).reshape(C_OUT, K * C_IN)
    return jnp.concatenate([w_flat, bias.reshape(C_OUT, 1)], axis=1)


@jax.jit
def conv_forward(x, w_aug):
    # Wrapper-side im2col:  im2col[k*C_IN + c, b*L_OUT + t] = x[b, c, t + k]
    # (matches the k*C_IN + c flattening used in prepare_weights, taps never
    #  cross batch boundaries).
    taps = jnp.stack([x[:, :, k:k + L_OUT] for k in range(K)], axis=0)  # (K, B, C_IN, L_OUT)
    im2col = taps.transpose(0, 2, 1, 3).reshape(K * C_IN, B * L_OUT)    # (12, 28)
    ones_row = jnp.ones((1, B * L_OUT), jnp.float32)
    cols = jnp.concatenate([im2col, ones_row], axis=0)                  # (13, 28)

    y = pl.pallas_call(
        conv1d_matmul_kernel,
        out_shape=jax.ShapeDtypeStruct((C_OUT, B * L_OUT), jnp.float32),
        in_specs=[
            pl.BlockSpec(memory_space=pltpu.MemorySpace.VMEM),
            pl.BlockSpec(memory_space=pltpu.MemorySpace.VMEM),
        ],
        out_specs=pl.BlockSpec(memory_space=pltpu.MemorySpace.VMEM),
    )(w_aug, cols)

    # (C_OUT, B*L_OUT) -> (B, C_OUT, L_OUT) NCW, matching torch.nn.Conv1d output.
    return y.reshape(C_OUT, B, L_OUT).transpose(1, 0, 2)


def ref_forward(x, w, bias):
    # pure-JAX reference reproducing PyTorch Conv1d(4, 12, 3) semantics
    dn = ('NCH', 'OIH', 'NCH')
    y = lax.conv_general_dilated(x, w, (1,), 'VALID', dimension_numbers=dn)
    return y + bias[None, :, None]


if __name__ == "__main__":
    key = jax.random.PRNGKey(0)
    kx, kw, kb = jax.random.split(key, 3)

    # deterministic inputs / params, PyTorch-default-style uniform(+/- 1/sqrt(fan_in))
    x = jax.random.normal(kx, (B, C_IN, L), jnp.float32)  # NCW, like torch Conv1d input
    bound = 1.0 / jnp.sqrt(jnp.float32(C_IN * K))
    w = jax.random.uniform(kw, (C_OUT, C_IN, K), jnp.float32, -bound, bound)
    bias = jax.random.uniform(kb, (C_OUT,), jnp.float32, -bound, bound)

    w_aug = prepare_weights(w, bias)   # done once at "module init"

    out = jax.block_until_ready(conv_forward(x, w_aug))
    ref = ref_forward(x, w, bias)

    assert out.shape == (B, C_OUT, L_OUT), out.shape
    assert jnp.allclose(out, ref, atol=1e-5, rtol=1e-5), (out, ref)
    print("KERNEL_OK")
</pallas_src>

<mosaic_0001>
module attributes {stable_mosaic.version = 11 : i64} {
  func.func @conv1d_matmul_kernel(%arg0: memref<12x13xf32, #tpu.memory_space<vmem>>, %arg1: memref<13x28xf32, #tpu.memory_space<vmem>>, %arg2: memref<12x28xf32, #tpu.memory_space<vmem>>) attributes {dimension_semantics = [], scalar_prefetch = 0 : i64, scratch_operands = 0 : i64, tpu.core_type = #tpu.core_type<tc>} {
    %c0 = arith.constant 0 : index
    %c0_0 = arith.constant 0 : index
    %0 = vector.load %arg0[%c0, %c0_0] : memref<12x13xf32, #tpu.memory_space<vmem>>, vector<12x13xf32>
    %c0_1 = arith.constant 0 : index
    %c0_2 = arith.constant 0 : index
    %1 = vector.load %arg1[%c0_1, %c0_2] : memref<13x28xf32, #tpu.memory_space<vmem>>, vector<13x28xf32>
    %cst = arith.constant dense<0.000000e+00> : vector<12x28xf32>
    %2 = tpu.matmul %0, %1, %cst {dimension_numbers = #tpu.dot_dimension_numbers<[1], [0], [0], [1], [0, 0, 1, 1], [], []>} : vector<12x13xf32>, vector<13x28xf32>, vector<12x28xf32> -> vector<12x28xf32>
    %c0_3 = arith.constant 0 : index
    %c0_4 = arith.constant 0 : index
    %3 = vector.load %arg2[%c0_3, %c0_4] : memref<12x28xf32, #tpu.memory_space<vmem>>, vector<12x28xf32>
    tpu.vector_store %arg2[%c0_3, %c0_4], %2 {strides = array<i32>} : memref<12x28xf32, #tpu.memory_space<vmem>>, vector<12x28xf32>,
    return
  }
}

</mosaic_0001>

<bundles_post_ra>
// kernel: conv_forward.1
= control target key start
LH: loop header
LB: loop body
LE: loop exit
PB: predicated region body
PF: predicated region fallthrough
CT: control target
= control target key end

     0   :  { %vm22_vm0 = vcmask 1044480   ;;  %vm15_vm1 = vcmask 105472   ;;  %vm130_vm2 = vmmov 1   ;;  %vm103_vm4 = vcmask 224256   ;;  %s164_s1 = inlined_call_operand.vmem [shape: f32[13,28], index: 1, kind: input, shape index: {}]   ;;  %s165_s0 = inlined_call_operand.vmem [shape: f32[12,13], index: 0, kind: input, shape index: {}]   ;;  %s166_s2 = inlined_call_operand.vmem [shape: f32[12,28], index: 2, kind: output, shape index: {}]  }
   0x1   :  { %v13_v0 = vld [vmem:[%s164_s1] sm:$0xff]  ;;  %v14_v1 = vld [vmem:[%s164_s1 + $0x8] sm:$0x1f]  ;;  %vm124_vm3 = vmpackc.low %vm22_vm0, %vm130_vm2  ;;  %vm101_vm5 = vcmask 228352  }
   0x2   :  { %v123_v2 = vpack.c.bf16 %v14_v1, %v13_v0  ;;  %v11_v3 = vld [vmem:[%s165_s0] sm:$0xff]  ;;  %v12_v4 = vld [vmem:[%s165_s0 + $0x8] sm:$0xf] }
   0x3   :  { %120 = vmatprep.mubr.msk.f32.mxu0 %vm15_vm1, %v11_v3 }
   0x4   :  { %125 = vmatprep.subr.msk.bf16.mxu0 %vm124_vm3, %v123_v2 }
   0x5   :  { %128 = vmatpush3.bf16.msk.msra.mxu0 %vm124_vm3, %v123_v2 }
   0x8   :  { %121 = vmatmul.mubr.msk.f32.vlgmr.msra.gmra.mrb[0].mxu0 %vm15_vm1, %v12_v4 }
  0xdb   :  { %v122_v5 = vpop.f32.mrb[0].mxu0 }
  0xdc   :  { %104 = vst.msk [vmem:[%s166_s2 + $0x8] sm:$0xf] %vm103_vm4, %v122_v5  ;;  %v92_v6 = vpop.f32.mrb[1].mxu0 }
  0xdd   :  { %102 = vst.msk [vmem:[%s166_s2] sm:$0xff] %vm101_vm5, %v92_v6 }

</bundles_post_ra>
